<compile_context>
chip_gen: v5e
topology: v5e:2x2
jax: 0.10.0
libtpu: 0.0.40
codegen_flags: <defaults>
</compile_context>

<pallas_src>
import jax
import jax.numpy as jnp
from jax.experimental import pallas as pl
from jax.experimental.pallas import tpu as pltpu


# ------------------------------- kernels ------------------------------------

def _stats_kernel(x_ref, sum_ref, sq_ref):
    # x_ref: (tile_r, tile_l) input tile; sum_ref/sq_ref: (tile_r, 1) f32
    # accumulators, resident across the lane (reduction) grid axis.
    x = x_ref[...].astype(jnp.float32)
    s = jnp.sum(x, axis=-1, keepdims=True)
    sq = jnp.sum(x * x, axis=-1, keepdims=True)

    @pl.when(pl.program_id(1) == 0)
    def _():
        sum_ref[...] = s
        sq_ref[...] = sq

    @pl.when(pl.program_id(1) > 0)
    def _():
        sum_ref[...] += s
        sq_ref[...] += sq


def _norm_relu_kernel(scale_ref, bias_ref, x_ref, o_ref):
    # scale/bias: (tile_r, 1) f32 per-row; x/o: (tile_r, tile_l).
    # Hot path: one FMA + one max per element (VPU), fully HBM-bound.
    y = x_ref[...].astype(jnp.float32) * scale_ref[...] + bias_ref[...]
    o_ref[...] = jnp.maximum(y, 0.0).astype(o_ref.dtype)


# ----------------------------- tiling helpers -------------------------------

def _round_up(v, m):
    return ((v + m - 1) // m) * m


def _vmem_budgets():
    """(per-tile byte budget, vmem_limit_bytes) sized per TPU generation."""
    try:
        cap = int(pltpu.get_tpu_info().vmem_capacity_bytes)
    except Exception:
        cap = 64 * 1024 * 1024  # conservative (v7x-sized) fallback
    if cap >= 100 * 1024 * 1024:
        # v5e / v6e: 128 MiB physical VMEM. Pass 2 needs 4x tile (in+out,
        # each double-buffered) -> ~24 MiB, comfortably under the limit.
        return 6 * 1024 * 1024, 64 * 1024 * 1024
    # v7x: 64 MiB per TensorCore -> keep the footprint well under it.
    return 3 * 1024 * 1024, 40 * 1024 * 1024


def _largest_divisor_multiple(total, unit, cap):
    """Largest multiple of `unit` dividing `total` with value <= cap (>= unit).

    Requires total % unit == 0.
    """
    t = max(unit, (min(cap, total) // unit) * unit)
    while total % t != 0:
        t -= unit
    return t


def _pick_tiles(Rtot, Lp, itemsize, budget):
    """Pick (tile_r, tile_l) for a (Rtot, Lp) array under a byte budget."""
    r_unit = 8  # vreg sublanes
    row_div8 = (Rtot % r_unit == 0)
    r_min = r_unit if row_div8 else Rtot  # non-multiple-of-8 rows: full extent

    # Lane tile: largest multiple of 128 dividing Lp under the budget assuming
    # the minimal row tile (Lp is a multiple of 128 by construction).
    lane_cap = max(128, budget // max(1, r_min * itemsize))
    tile_l = _largest_divisor_multiple(Lp, 128, lane_cap)

    tile_r = r_min
    if row_div8 and tile_l == Lp:
        # Whole rows fit: grow the row tile to fill the budget, but keep at
        # least 2 row blocks when possible so the "parallel" grid axis can be
        # split across TensorCores (v7x megacore).
        row_cap = max(r_unit, budget // max(1, Lp * itemsize))
        if Rtot >= 2 * r_unit:
            row_cap = min(row_cap, Rtot // 2)
        tile_r = _largest_divisor_multiple(Rtot, r_unit, row_cap)
    return tile_r, tile_l


# ------------------------------- wrapper -------------------------------------

def batch_norm_relu(x_nchw, gamma, beta, eps=1e-5):
    """BatchNorm2d (training-mode batch statistics) + ReLU.

    x_nchw: (N, C, H, W);  gamma, beta: (C,).  Returns (N, C, H, W), input dtype.
    """
    N, C, H, W = x_nchw.shape
    L = H * W
    Rtot = N * C
    itemsize = jnp.dtype(x_nchw.dtype).itemsize

    budget, vmem_limit = _vmem_budgets()

    # Rows of spatial elements: (N*C, H*W). Contiguous reshape, no HBM traffic.
    x2 = x_nchw.reshape(Rtot, L)
    # Zero-pad the lane axis to a multiple of 128: zeros contribute nothing to
    # sum / sum-of-squares (we divide by the true count), and the padded output
    # columns are sliced off below.
    Lp = _round_up(L, 128)
    if Lp != L:
        x2 = jnp.pad(x2, ((0, 0), (0, Lp - L)))

    tile_r, tile_l = _pick_tiles(Rtot, Lp, itemsize, budget)
    num_r = Rtot // tile_r
    num_l = Lp // tile_l

    # ---- pass 1: per-(n, c) row sum and sum-of-squares -----------------------
    stats_cost = pl.CostEstimate(
        flops=3 * Rtot * Lp,
        transcendentals=0,
        bytes_accessed=Rtot * Lp * itemsize + 2 * Rtot * 4,
    )
    sum_out, sq_out = pl.pallas_call(
        _stats_kernel,
        out_shape=(
            jax.ShapeDtypeStruct((Rtot, 1), jnp.float32),
            jax.ShapeDtypeStruct((Rtot, 1), jnp.float32),
        ),
        grid_spec=pltpu.PrefetchScalarGridSpec(
            num_scalar_prefetch=0,
            grid=(num_r, num_l),
            in_specs=[pl.BlockSpec((tile_r, tile_l), lambda r, l: (r, l))],
            out_specs=(
                pl.BlockSpec((tile_r, 1), lambda r, l: (r, 0)),
                pl.BlockSpec((tile_r, 1), lambda r, l: (r, 0)),
            ),
        ),
        compiler_params=pltpu.CompilerParams(
            dimension_semantics=("parallel", "arbitrary"),
            vmem_limit_bytes=vmem_limit,
        ),
        cost_estimate=stats_cost,
    )(x2)

    # ---- tiny combine on (C,) scalars: fold affine into scale/bias ----------
    count = float(N * L)  # true element count (lane padding excluded)
    total = jnp.sum(sum_out.reshape(N, C), axis=0)      # (C,)
    total_sq = jnp.sum(sq_out.reshape(N, C), axis=0)    # (C,)
    mean = total / count
    # TODO(synk): E[x^2]-E[x]^2 in f32 can cancel when |mean| >> std at very
    # large N*L; a centered second stats pass would be more robust but costs a
    # third HBM sweep.  Clamp tiny negative cancellation residue.
    var = jnp.maximum(total_sq / count - mean * mean, 0.0)
    inv_std = jax.lax.rsqrt(var + eps)
    scale = gamma.astype(jnp.float32) * inv_std                     # (C,)
    bias = beta.astype(jnp.float32) - mean * scale                  # (C,)
    scale_rows = jnp.broadcast_to(scale[None, :], (N, C)).reshape(Rtot, 1)
    bias_rows = jnp.broadcast_to(bias[None, :], (N, C)).reshape(Rtot, 1)

    # ---- pass 2: y = max(x * scale + bias, 0) --------------------------------
    norm_cost = pl.CostEstimate(
        flops=3 * Rtot * Lp,
        transcendentals=0,
        bytes_accessed=2 * Rtot * Lp * itemsize + 2 * Rtot * 4,
    )
    out2 = pl.pallas_call(
        _norm_relu_kernel,
        out_shape=jax.ShapeDtypeStruct((Rtot, Lp), x_nchw.dtype),
        grid_spec=pltpu.PrefetchScalarGridSpec(
            num_scalar_prefetch=0,
            grid=(num_r, num_l),
            in_specs=[
                pl.BlockSpec((tile_r, 1), lambda r, l: (r, 0)),
                pl.BlockSpec((tile_r, 1), lambda r, l: (r, 0)),
                pl.BlockSpec((tile_r, tile_l), lambda r, l: (r, l)),
            ],
            out_specs=pl.BlockSpec((tile_r, tile_l), lambda r, l: (r, l)),
        ),
        compiler_params=pltpu.CompilerParams(
            dimension_semantics=("parallel", "parallel"),
            vmem_limit_bytes=vmem_limit,
        ),
        cost_estimate=norm_cost,
    )(scale_rows, bias_rows, x2)

    if Lp != L:
        out2 = out2[:, :L]
    return out2.reshape(N, C, H, W)


# ------------------------------- reference -----------------------------------

def _reference(x_nchw, gamma, beta, eps=1e-5):
    xf = x_nchw.astype(jnp.float32)
    mean = jnp.mean(xf, axis=(0, 2, 3), keepdims=True)
    var = jnp.mean((xf - mean) ** 2, axis=(0, 2, 3), keepdims=True)
    y = (xf - mean) * jax.lax.rsqrt(var + eps)
    y = y * gamma.reshape(1, -1, 1, 1) + beta.reshape(1, -1, 1, 1)
    return jnp.maximum(y, 0.0).astype(x_nchw.dtype)


if __name__ == "__main__":
    key = jax.random.PRNGKey(0)
    kx, kg, kb = jax.random.split(key, 3)

    N, C, H, W = 2, 4, 16, 16
    x = jax.random.normal(kx, (N, C, H, W), dtype=jnp.float32)
    # nn.BatchNorm2d default init is weight=1, bias=0; use non-trivial
    # deterministic values so the affine path is exercised.
    gamma = 1.0 + 0.1 * jax.random.normal(kg, (C,), dtype=jnp.float32)
    beta = 0.1 * jax.random.normal(kb, (C,), dtype=jnp.float32)

    out = batch_norm_relu(x, gamma, beta, eps=1e-5)
    out = jax.block_until_ready(out)

    ref = _reference(x, gamma, beta, eps=1e-5)
    assert out.shape == (N, C, H, W)
    assert jnp.allclose(out, ref, atol=1e-4, rtol=1e-4), float(
        jnp.max(jnp.abs(out.astype(jnp.float32) - ref.astype(jnp.float32)))
    )

    print("KERNEL_OK")
</pallas_src>

<mosaic_0001>
module attributes {stable_mosaic.version = 11 : i64} {
  func.func @_stats_kernel(%arg0: i32, %arg1: i32, %arg2: memref<8x256xf32, #tpu.memory_space<vmem>>, %arg3: memref<8x1xf32, #tpu.memory_space<vmem>>, %arg4: memref<8x1xf32, #tpu.memory_space<vmem>>) attributes {dimension_semantics = [#tpu.dimension_semantics<parallel>, #tpu.dimension_semantics<arbitrary>], iteration_bounds = array<i64: 1, 1>, scalar_prefetch = 0 : i64, scratch_operands = 0 : i64, tpu.core_type = #tpu.core_type<tc>, window_params = [{transform_indices = @transform_0, window_bounds = array<i64: 8, 256>}, {transform_indices = @transform_1, window_bounds = array<i64: 8, 1>}, {transform_indices = @transform_2, window_bounds = array<i64: 8, 1>}]} {
    %c0 = arith.constant 0 : index
    %c0_0 = arith.constant 0 : index
    %0 = vector.load %arg2[%c0, %c0_0] : memref<8x256xf32, #tpu.memory_space<vmem>>, vector<8x256xf32>
    %cst = arith.constant dense<0.000000e+00> : vector<8xf32>
    %1 = vector.multi_reduction <add>, %0, %cst [1] : vector<8x256xf32> to vector<8xf32>
    %2 = vector.shape_cast %1 : vector<8xf32> to vector<8x1xf32>
    %3 = arith.mulf %0, %0 : vector<8x256xf32>
    %cst_1 = arith.constant dense<0.000000e+00> : vector<8xf32>
    %4 = vector.multi_reduction <add>, %3, %cst_1 [1] : vector<8x256xf32> to vector<8xf32>
    %5 = vector.shape_cast %4 : vector<8xf32> to vector<8x1xf32>
    %c0_i32 = arith.constant 0 : i32
    %6 = arith.cmpi eq, %arg1, %c0_i32 : i32
    %7 = arith.extui %6 : i1 to i32
    %c0_i32_2 = arith.constant 0 : i32
    %8 = arith.cmpi ne, %7, %c0_i32_2 : i32
    scf.if %8 {
      %c0_5 = arith.constant 0 : index
      %c0_6 = arith.constant 0 : index
      %12 = vector.load %arg3[%c0_5, %c0_6] : memref<8x1xf32, #tpu.memory_space<vmem>>, vector<8x1xf32>
      tpu.vector_store %arg3[%c0_5, %c0_6], %2 {strides = array<i32>} : memref<8x1xf32, #tpu.memory_space<vmem>>, vector<8x1xf32>,
      %c0_7 = arith.constant 0 : index
      %c0_8 = arith.constant 0 : index
      %13 = vector.load %arg4[%c0_7, %c0_8] : memref<8x1xf32, #tpu.memory_space<vmem>>, vector<8x1xf32>
      tpu.vector_store %arg4[%c0_7, %c0_8], %5 {strides = array<i32>} : memref<8x1xf32, #tpu.memory_space<vmem>>, vector<8x1xf32>,
    } else {
    }
    %c0_i32_3 = arith.constant 0 : i32
    %9 = arith.cmpi sgt, %arg1, %c0_i32_3 : i32
    %10 = arith.extui %9 : i1 to i32
    %c0_i32_4 = arith.constant 0 : i32
    %11 = arith.cmpi ne, %10, %c0_i32_4 : i32
    scf.if %11 {
      %c0_5 = arith.constant 0 : index
      %c0_6 = arith.constant 0 : index
      %12 = vector.load %arg3[%c0_5, %c0_6] : memref<8x1xf32, #tpu.memory_space<vmem>>, vector<8x1xf32>
      %13 = arith.addf %12, %2 : vector<8x1xf32>
      %c0_7 = arith.constant 0 : index
      %c0_8 = arith.constant 0 : index
      %14 = vector.load %arg3[%c0_7, %c0_8] : memref<8x1xf32, #tpu.memory_space<vmem>>, vector<8x1xf32>
      tpu.vector_store %arg3[%c0_7, %c0_8], %13 {strides = array<i32>} : memref<8x1xf32, #tpu.memory_space<vmem>>, vector<8x1xf32>,
      %c0_9 = arith.constant 0 : index
      %c0_10 = arith.constant 0 : index
      %15 = vector.load %arg4[%c0_9, %c0_10] : memref<8x1xf32, #tpu.memory_space<vmem>>, vector<8x1xf32>
      %16 = arith.addf %15, %5 : vector<8x1xf32>
      %c0_11 = arith.constant 0 : index
      %c0_12 = arith.constant 0 : index
      %17 = vector.load %arg4[%c0_11, %c0_12] : memref<8x1xf32, #tpu.memory_space<vmem>>, vector<8x1xf32>
      tpu.vector_store %arg4[%c0_11, %c0_12], %16 {strides = array<i32>} : memref<8x1xf32, #tpu.memory_space<vmem>>, vector<8x1xf32>,
    } else {
    }
    return
  }
  func.func @transform_0(%arg0: i32, %arg1: i32) -> (i32, i32) {
    %c0_i32 = arith.constant 0 : i32
    return %arg0, %arg1 : i32, i32
  }
  func.func @transform_1(%arg0: i32, %arg1: i32) -> (i32, i32) {
    %c0_i32 = arith.constant 0 : i32
    %c0_i32_0 = arith.constant 0 : i32
    return %arg0, %c0_i32 : i32, i32
  }
  func.func @transform_2(%arg0: i32, %arg1: i32) -> (i32, i32) {
    %c0_i32 = arith.constant 0 : i32
    %c0_i32_0 = arith.constant 0 : i32
    return %arg0, %c0_i32 : i32, i32
  }
}

</mosaic_0001>

<bundles_post_ra>
// kernel: tpu_custom_call.1
= control target key start
LH: loop header
LB: loop body
LE: loop exit
PB: predicated region body
PF: predicated region fallthrough
CT: control target
= control target key end

     0   :  { %8 = vsyncpa [#allocation3], 0  ;;  %s88_s12 = smov [#allocation2]   ;;  %s113_s0 = inlined_call_operand.hbm [shape: f32[8,256], index: 0, kind: input, shape index: {}]   ;;  %s114_s1 = inlined_call_operand.vmem [shape: f32[8,1], index: 1, kind: output, shape index: {0}]   ;;  %s115_s2 = inlined_call_operand.vmem [shape: f32[8,1], index: 2, kind: output, shape index: {1}]  }
   0x1   :  { %s14_s11 = sshll.u32 %s113_s0, 4  ;;  %s16_s13 = sshll.u32 %s88_s12, 4  ;;  %s15_s11 = int_to_ptr.hbm [resolvable:$true] %s14_s11  ;;  %s17_s13 = int_to_ptr.vmem [resolvable:$true] %s16_s13 }
   0x2   :  { %19 = dma.hbm_to_vmem [thread:$0]  %s15_s11, 256, %s17_s13, [#allocation3]  }
   0x3   :  { %86 = dma.done.wait [#allocation3], 256  }
   0x4   :  { %87 = vsyncadd [#allocation3], 4294967040  ;;  %v24_v0 = vld [vmem:[#allocation2] sm:$0xff]  ;;  %v25_v1 = vld [vmem:[#allocation2 + $0x8] sm:$0xff]  ;;  %vm38_vm0 = vcmask 7168  }
   0x5   :  { %v26_v2 = vadd.f32 %v25_v1, %v24_v0  ;;  %v29_v3 = vmul.f32 %v24_v0, %v24_v0  ;;  %v30_v4 = vmul.f32 %v25_v1, %v25_v1 }
   0x7   :  { %27 = vadd.xlane.f32.xlu0 %v26_v2  ;;  %v31_v5 = vadd.f32 %v30_v4, %v29_v3 }
   0xf   :  { %32 = vadd.xlane.f32.xlu0 %v31_v5 }
  0x7a   :  { %v28_v6 = vpop.xlane.xlu0 %27 }
  0x7b   :  { %39 = vst.msk [vmem:[%s114_s1] sm:$0xff] %vm38_vm0, %v28_v6 }
  0x82   :  { %v33_v7 = vpop.xlane.xlu0 %32 }
  0x83   :  { %40 = vst.msk [vmem:[%s115_s2] sm:$0xff] %vm38_vm0, %v33_v7 }
  0x84   :  { %60 = vsyncpa [#allocation3], 1 }

</bundles_post_ra>
